<compile_context>
chip_gen: v5e
topology: v5e:2x2
jax: 0.10.0
libtpu: 0.0.40
codegen_flags: <defaults>
</compile_context>

<pallas_src>
import functools

import jax
import jax.numpy as jnp
from jax.experimental import pallas as pl
from jax.experimental.pallas import tpu as pltpu


def _round8(c):
    return ((c + 7) // 8) * 8


def _ru_first_down_kernel(a1_ref, a2_ref, r_ref, shift_ref, mask_ref,
                          x_ref, o_ref):
    """Fused conv3x3+BN+ReLU -> conv3x3+BN -> (+1x1 conv+BN) -> ELU.

    All batch elements of this grid step are stacked on the sublane axis; the
    per-element 2-row zero pads isolate them, so each conv is one tall
    weight-stationary matmul.

      a1_ref    (3*Wc_in,  Wc_out)   conv1 banded weights (BN1 scale folded)
      a2_ref    (3*Wc_out, Wc_out)   conv2 banded weights (BN2 scale folded)
      r_ref     (Wc_in,    Wc_out)   1x1 residual weights (BNr scale folded)
      shift_ref (2, 1, Wc_out)       [shift1, shift2 + shift_r]
      mask_ref  (rows-2, Wc_out)     1.0 on real conv1 rows, 0.0 on the rows
                                      that act as conv2's zero padding
      x_ref     (rows, Wc_in)        stacked input, fused (W, C) lane layout
      o_ref     (rows, Wc_out)       stacked output (last 4 rows unused)
    """
    rows = x_ref.shape[0]
    r1 = rows - 2          # conv1 rows (incl. per-element conv2 pad rows)
    r2 = rows - 4          # conv2 / output rows

    x = x_ref[...]                                            # (rows, Wc_in)

    # conv1 + BN1 + ReLU: single K = 3*Wc_in matmul over the 3 kh taps.
    xcat = jnp.concatenate([x[0:r1], x[1:r1 + 1], x[2:r1 + 2]], axis=-1)
    t1 = jnp.dot(xcat, a1_ref[...], preferred_element_type=jnp.float32)
    t1 = jnp.maximum(t1 + shift_ref[0], 0.0) * mask_ref[...]  # (r1, Wc_out)

    # conv2 + BN2: single K = 3*Wc_out matmul.
    tcat = jnp.concatenate([t1[0:r2], t1[1:r2 + 1], t1[2:r2 + 2]], axis=-1)
    y = jnp.dot(tcat, a2_ref[...], preferred_element_type=jnp.float32)

    # 1x1 residual conv + BNr (its shift is pre-summed into shift_ref[1]).
    res = jnp.dot(x[2:r2 + 2], r_ref[...], preferred_element_type=jnp.float32)

    # ELU(alpha=1) epilogue.  exp(min(z,0)) - 1 == expm1(z) to ~1e-7 abs.
    z = y + res + shift_ref[1]
    o_ref[0:r2, :] = jnp.where(z > 0, z, jnp.exp(jnp.minimum(z, 0.0)) - 1.0)
    o_ref[r2:rows, :] = jnp.zeros((4, o_ref.shape[1]), o_ref.dtype)


def prepare_ru_first_down(W,
                          w1, b1, g1, be1, m1, v1,      # conv1 + BN1
                          w2, b2, g2, be2, m2, v2,      # conv2 + BN2
                          wr, gr, ber, mr, vr,          # 1x1 res conv + BNr
                          eps=1e-5):
    """One-time weight preprocessing: banded MXU weights + BN(eval) folding."""
    C_out, C_in = int(w1.shape[0]), int(w1.shape[1])
    C_in_p, C_out_p = _round8(C_in), _round8(C_out)
    Wc_in, Wc_out = W * C_in_p, W * C_out_p

    def fold_bn(gamma, beta, mean, var, bias):
        s = gamma / jnp.sqrt(var + eps)
        return s, (bias - mean) * s + beta

    sc1, sh1 = fold_bn(g1, be1, m1, v1, b1)
    sc2, sh2 = fold_bn(g2, be2, m2, v2, b2)
    scr, shr = fold_bn(gr, ber, mr, vr, jnp.zeros_like(gr))

    def lane_vec(v):  # (C_out,) -> (Wc_out,), [w-major, c-minor]
        vp = jnp.pad(v.astype(jnp.float32), (0, C_out_p - C_out))
        return jnp.tile(vp, W)

    # shift2 and the residual shift feed the same add -> pre-sum them.
    shifts = jnp.stack([lane_vec(sh1),
                        lane_vec(sh2 + shr)], axis=0).reshape(2, 1, Wc_out)

    # Banded weight matrices over the fused (W, C) lane axis.
    # S[kw, u, w] = 1 iff input column u == w + kw - 1 (W zero-pad for free).
    kw_idx = jnp.arange(3)[:, None, None]
    u_idx = jnp.arange(W)[None, :, None]
    w_idx = jnp.arange(W)[None, None, :]
    S = (u_idx == (w_idx + kw_idx - 1)).astype(jnp.float32)          # (3, W, W)

    def band_3x3(w_oihw, scale, cin, cout):
        cin_p, cout_p = _round8(cin), _round8(cout)
        t = jnp.einsum('kuw,ochk->hucwo', S, w_oihw.astype(jnp.float32))
        t = t * scale[None, None, None, None, :]          # fold BN scale
        t = jnp.pad(t, ((0, 0), (0, 0), (0, cin_p - cin),
                        (0, 0), (0, cout_p - cout)))
        # merge the 3 kh taps into a single K = 3*W*cin_p contraction
        return t.reshape(3 * W * cin_p, W * cout_p)

    A1 = band_3x3(w1, sc1, C_in, C_out)                   # (3*Wc_in,  Wc_out)
    A2 = band_3x3(w2, sc2, C_out, C_out)                  # (3*Wc_out, Wc_out)

    wr_s = wr.reshape(C_out, C_in).astype(jnp.float32) * scr[:, None]
    tr = jnp.einsum('uw,oc->ucwo', jnp.eye(W, dtype=jnp.float32), wr_s)
    tr = jnp.pad(tr, ((0, 0), (0, C_in_p - C_in), (0, 0), (0, C_out_p - C_out)))
    R = tr.reshape(Wc_in, Wc_out)                         # (Wc_in, Wc_out)

    return A1, A2, R, shifts


@functools.partial(jax.jit, static_argnames=("c_out", "batch_block"))
def ru_first_down_apply(A1, A2, R, shifts, x_nchw, c_out, batch_block=None):
    """RU_first_down forward (eval-mode BN).  x_nchw: (N, C_in, H, W) f32."""
    N, C_in, H, W = x_nchw.shape
    C_in_p, C_out_p = _round8(C_in), _round8(c_out)
    Wc_in, Wc_out = W * C_in_p, W * C_out_p

    B_blk = N if batch_block is None else batch_block
    G = (N + B_blk - 1) // B_blk        # grid steps (>1 only for large N / v7x)
    N_pad = G * B_blk
    rows_blk = B_blk * (H + 4)
    # NOTE: when G > 1, rows_blk must be a multiple of 8 (block divisibility).

    # NCHW -> stacked fused-lane layout: (N_pad*(H+4), W*C_in_p).  The 2+2
    # zero rows per element isolate batch elements inside one tall matmul.
    x_nhwc = jnp.transpose(x_nchw.astype(jnp.float32), (0, 2, 3, 1))
    x_nhwc = jnp.pad(x_nhwc, ((0, N_pad - N), (2, 2), (0, 0),
                              (0, C_in_p - C_in)))
    x_in = x_nhwc.reshape(N_pad * (H + 4), Wc_in)

    # conv1-row mask: zero the 2 rows per element that act as conv2's padding.
    ridx = jnp.arange(rows_blk - 2)
    pos = ridx % (H + 4)
    mask = jnp.where((pos == 0) | (pos == H + 1), 0.0, 1.0).astype(jnp.float32)
    mask = jnp.broadcast_to(mask[:, None], (rows_blk - 2, Wc_out))

    out = pl.pallas_call(
        _ru_first_down_kernel,
        out_shape=jax.ShapeDtypeStruct((N_pad * (H + 4), Wc_out), jnp.float32),
        grid_spec=pltpu.PrefetchScalarGridSpec(
            num_scalar_prefetch=0,
            grid=(G,),
            in_specs=[
                pl.BlockSpec((3 * Wc_in, Wc_out), lambda g: (0, 0)),
                pl.BlockSpec((3 * Wc_out, Wc_out), lambda g: (0, 0)),
                pl.BlockSpec((Wc_in, Wc_out), lambda g: (0, 0)),
                pl.BlockSpec((2, 1, Wc_out), lambda g: (0, 0, 0)),
                pl.BlockSpec((rows_blk - 2, Wc_out), lambda g: (0, 0)),
                pl.BlockSpec((rows_blk, Wc_in), lambda g: (g, 0)),
            ],
            out_specs=pl.BlockSpec((rows_blk, Wc_out), lambda g: (g, 0)),
        ),
        compiler_params=pltpu.CompilerParams(
            dimension_semantics=("parallel",)),
    )(A1, A2, R, shifts, mask, x_in)

    # stacked fused layout -> PyTorch NCHW
    out = out.reshape(N_pad, H + 4, W, C_out_p)[:N, :H, :, :c_out]
    return jnp.transpose(out, (0, 3, 1, 2))


def _reference(x, w1, b1, g1, be1, m1, v1, w2, b2, g2, be2, m2, v2,
               wr, gr, ber, mr, vr, eps=1e-5):
    def conv(inp, w, pad):
        return jax.lax.conv_general_dilated(
            inp, w, (1, 1), ((pad, pad), (pad, pad)),
            dimension_numbers=("NCHW", "OIHW", "NCHW"),
            precision=jax.lax.Precision.HIGHEST)

    def bn(inp, g, b, m, v):
        return (g[None, :, None, None] * (inp - m[None, :, None, None])
                / jnp.sqrt(v[None, :, None, None] + eps)
                + b[None, :, None, None])

    t = bn(conv(x, w1, 1) + b1[None, :, None, None], g1, be1, m1, v1)
    t = jnp.maximum(t, 0.0)
    t = bn(conv(t, w2, 1) + b2[None, :, None, None], g2, be2, m2, v2)
    r = bn(conv(x, wr, 0), gr, ber, mr, vr)
    z = t + r
    return jnp.where(z > 0, z, jnp.expm1(jnp.minimum(z, 0.0)))


if __name__ == "__main__":
    key = jax.random.PRNGKey(0)
    keys = jax.random.split(key, 18)
    N, C_in, H, W = 2, 4, 16, 16
    C_out = 8

    x = jax.random.normal(keys[0], (N, C_in, H, W), jnp.float32)

    w1 = 0.1 * jax.random.normal(keys[1], (C_out, C_in, 3, 3), jnp.float32)
    b1 = 0.1 * jax.random.normal(keys[2], (C_out,), jnp.float32)
    g1 = 1.0 + 0.1 * jax.random.normal(keys[3], (C_out,), jnp.float32)
    be1 = 0.1 * jax.random.normal(keys[4], (C_out,), jnp.float32)
    m1 = 0.1 * jax.random.normal(keys[5], (C_out,), jnp.float32)
    v1 = jnp.abs(1.0 + 0.1 * jax.random.normal(keys[6], (C_out,), jnp.float32))

    w2 = 0.1 * jax.random.normal(keys[7], (C_out, C_out, 3, 3), jnp.float32)
    b2 = 0.1 * jax.random.normal(keys[8], (C_out,), jnp.float32)
    g2 = 1.0 + 0.1 * jax.random.normal(keys[9], (C_out,), jnp.float32)
    be2 = 0.1 * jax.random.normal(keys[10], (C_out,), jnp.float32)
    m2 = 0.1 * jax.random.normal(keys[11], (C_out,), jnp.float32)
    v2 = jnp.abs(1.0 + 0.1 * jax.random.normal(keys[12], (C_out,), jnp.float32))

    wr = 0.1 * jax.random.normal(keys[13], (C_out, C_in, 1, 1), jnp.float32)
    gr = 1.0 + 0.1 * jax.random.normal(keys[14], (C_out,), jnp.float32)
    ber = 0.1 * jax.random.normal(keys[15], (C_out,), jnp.float32)
    mr = 0.1 * jax.random.normal(keys[16], (C_out,), jnp.float32)
    vr = jnp.abs(1.0 + 0.1 * jax.random.normal(keys[17], (C_out,), jnp.float32))

    # one-time weight preprocessing (hoisted out of the per-call path)
    A1, A2, R, shifts = prepare_ru_first_down(
        W, w1, b1, g1, be1, m1, v1, w2, b2, g2, be2, m2, v2,
        wr, gr, ber, mr, vr)
    A1, A2, R, shifts = jax.block_until_ready((A1, A2, R, shifts))

    out = ru_first_down_apply(A1, A2, R, shifts, x, c_out=C_out)
    out = jax.block_until_ready(out)

    ref = _reference(x, w1, b1, g1, be1, m1, v1,
                     w2, b2, g2, be2, m2, v2, wr, gr, ber, mr, vr)
    assert out.shape == (N, C_out, H, W), out.shape
    max_err = float(jnp.max(jnp.abs(out - ref)))
    assert jnp.allclose(out, ref, atol=2e-4, rtol=1e-3), max_err

    print("KERNEL_OK")
</pallas_src>

<mosaic_0001>
module attributes {stable_mosaic.version = 11 : i64} {
  func.func @_ru_first_down_kernel(%arg0: i32, %arg1: memref<384x128xf32, #tpu.memory_space<vmem>>, %arg2: memref<384x128xf32, #tpu.memory_space<vmem>>, %arg3: memref<128x128xf32, #tpu.memory_space<vmem>>, %arg4: memref<2x1x128xf32, #tpu.memory_space<vmem>>, %arg5: memref<38x128xf32, #tpu.memory_space<vmem>>, %arg6: memref<40x128xf32, #tpu.memory_space<vmem>>, %arg7: memref<40x128xf32, #tpu.memory_space<vmem>>) attributes {dimension_semantics = [#tpu.dimension_semantics<parallel>], iteration_bounds = array<i64: 1>, scalar_prefetch = 0 : i64, scratch_operands = 0 : i64, tpu.core_type = #tpu.core_type<tc>, window_params = [{pipeline_mode = #tpu.pipeline_mode<synchronous>, transform_indices = @transform_0, window_bounds = array<i64: 384, 128>}, {pipeline_mode = #tpu.pipeline_mode<synchronous>, transform_indices = @transform_1, window_bounds = array<i64: 384, 128>}, {pipeline_mode = #tpu.pipeline_mode<synchronous>, transform_indices = @transform_2, window_bounds = array<i64: 128, 128>}, {pipeline_mode = #tpu.pipeline_mode<synchronous>, transform_indices = @transform_3, window_bounds = array<i64: 2, 1, 128>}, {pipeline_mode = #tpu.pipeline_mode<synchronous>, transform_indices = @transform_4, window_bounds = array<i64: 38, 128>}, {transform_indices = @transform_5, window_bounds = array<i64: 40, 128>}, {transform_indices = @transform_6, window_bounds = array<i64: 40, 128>}]} {
    %c0 = arith.constant 0 : index
    %c0_0 = arith.constant 0 : index
    %0 = vector.load %arg6[%c0, %c0_0] : memref<40x128xf32, #tpu.memory_space<vmem>>, vector<40x128xf32>
    %1 = vector.extract_strided_slice %0 {offsets = [0, 0], sizes = [38, 128], strides = [1, 1]} : vector<40x128xf32> to vector<38x128xf32>
    %2 = vector.extract_strided_slice %0 {offsets = [1, 0], sizes = [38, 128], strides = [1, 1]} : vector<40x128xf32> to vector<38x128xf32>
    %3 = vector.extract_strided_slice %0 {offsets = [2, 0], sizes = [38, 128], strides = [1, 1]} : vector<40x128xf32> to vector<38x128xf32>
    %4 = tpu.concatenate %1, %2, %3 in 1 : vector<38x128xf32>, vector<38x128xf32>, vector<38x128xf32> -> vector<38x384xf32>
    %c0_1 = arith.constant 0 : index
    %c0_2 = arith.constant 0 : index
    %5 = vector.load %arg1[%c0_1, %c0_2] : memref<384x128xf32, #tpu.memory_space<vmem>>, vector<384x128xf32>
    %cst = arith.constant dense<0.000000e+00> : vector<38x128xf32>
    %6 = tpu.matmul %4, %5, %cst {dimension_numbers = #tpu.dot_dimension_numbers<[1], [0], [0], [1], [0, 0, 1, 1], [], []>} : vector<38x384xf32>, vector<384x128xf32>, vector<38x128xf32> -> vector<38x128xf32>
    %c0_3 = arith.constant 0 : index
    %c0_4 = arith.constant 0 : index
    %c0_5 = arith.constant 0 : index
    %7 = vector.load %arg4[%c0_3, %c0_4, %c0_5] : memref<2x1x128xf32, #tpu.memory_space<vmem>>, vector<1x1x128xf32>
    %8 = vector.shape_cast %7 : vector<1x1x128xf32> to vector<1x128xf32>
    %9 = vector.broadcast %8 : vector<1x128xf32> to vector<38x128xf32>
    %10 = arith.addf %6, %9 : vector<38x128xf32>
    %cst_6 = arith.constant 0.000000e+00 : f32
    %11 = vector.broadcast %cst_6 : f32 to vector<38x128xf32>
    %12 = arith.maximumf %10, %11 : vector<38x128xf32>
    %c0_7 = arith.constant 0 : index
    %c0_8 = arith.constant 0 : index
    %13 = vector.load %arg5[%c0_7, %c0_8] : memref<38x128xf32, #tpu.memory_space<vmem>>, vector<38x128xf32>
    %14 = arith.mulf %12, %13 : vector<38x128xf32>
    %15 = vector.extract_strided_slice %14 {offsets = [0, 0], sizes = [36, 128], strides = [1, 1]} : vector<38x128xf32> to vector<36x128xf32>
    %16 = vector.extract_strided_slice %14 {offsets = [1, 0], sizes = [36, 128], strides = [1, 1]} : vector<38x128xf32> to vector<36x128xf32>
    %17 = vector.extract_strided_slice %14 {offsets = [2, 0], sizes = [36, 128], strides = [1, 1]} : vector<38x128xf32> to vector<36x128xf32>
    %18 = tpu.concatenate %15, %16, %17 in 1 : vector<36x128xf32>, vector<36x128xf32>, vector<36x128xf32> -> vector<36x384xf32>
    %c0_9 = arith.constant 0 : index
    %c0_10 = arith.constant 0 : index
    %19 = vector.load %arg2[%c0_9, %c0_10] : memref<384x128xf32, #tpu.memory_space<vmem>>, vector<384x128xf32>
    %cst_11 = arith.constant dense<0.000000e+00> : vector<36x128xf32>
    %20 = tpu.matmul %18, %19, %cst_11 {dimension_numbers = #tpu.dot_dimension_numbers<[1], [0], [0], [1], [0, 0, 1, 1], [], []>} : vector<36x384xf32>, vector<384x128xf32>, vector<36x128xf32> -> vector<36x128xf32>
    %21 = vector.extract_strided_slice %0 {offsets = [2, 0], sizes = [36, 128], strides = [1, 1]} : vector<40x128xf32> to vector<36x128xf32>
    %c0_12 = arith.constant 0 : index
    %c0_13 = arith.constant 0 : index
    %22 = vector.load %arg3[%c0_12, %c0_13] : memref<128x128xf32, #tpu.memory_space<vmem>>, vector<128x128xf32>
    %cst_14 = arith.constant dense<0.000000e+00> : vector<36x128xf32>
    %23 = tpu.matmul %21, %22, %cst_14 {dimension_numbers = #tpu.dot_dimension_numbers<[1], [0], [0], [1], [0, 0, 1, 1], [], []>} : vector<36x128xf32>, vector<128x128xf32>, vector<36x128xf32> -> vector<36x128xf32>
    %24 = arith.addf %20, %23 : vector<36x128xf32>
    %c1 = arith.constant 1 : index
    %c0_15 = arith.constant 0 : index
    %c0_16 = arith.constant 0 : index
    %25 = vector.load %arg4[%c1, %c0_15, %c0_16] : memref<2x1x128xf32, #tpu.memory_space<vmem>>, vector<1x1x128xf32>
    %26 = vector.shape_cast %25 : vector<1x1x128xf32> to vector<1x128xf32>
    %27 = vector.broadcast %26 : vector<1x128xf32> to vector<36x128xf32>
    %28 = arith.addf %24, %27 : vector<36x128xf32>
    %cst_17 = arith.constant 0.000000e+00 : f32
    %29 = vector.broadcast %cst_17 : f32 to vector<36x128xf32>
    %30 = arith.cmpf ogt, %28, %29 : vector<36x128xf32>
    %cst_18 = arith.constant 0.000000e+00 : f32
    %31 = vector.broadcast %cst_18 : f32 to vector<36x128xf32>
    %32 = arith.minimumf %28, %31 : vector<36x128xf32>
    %33 = math.exp %32 : vector<36x128xf32>
    %cst_19 = arith.constant 1.000000e+00 : f32
    %34 = vector.broadcast %cst_19 : f32 to vector<36x128xf32>
    %35 = arith.subf %33, %34 : vector<36x128xf32>
    %36 = arith.select %30, %28, %35 : vector<36x128xi1>, vector<36x128xf32>
    %c0_20 = arith.constant 0 : index
    %c0_21 = arith.constant 0 : index
    %37 = vector.load %arg7[%c0_20, %c0_21] : memref<40x128xf32, #tpu.memory_space<vmem>>, vector<36x128xf32>
    tpu.vector_store %arg7[%c0_20, %c0_21], %36 {strides = array<i32>} : memref<40x128xf32, #tpu.memory_space<vmem>>, vector<36x128xf32>,
    %cst_22 = arith.constant 0.000000e+00 : f32
    %38 = vector.broadcast %cst_22 : f32 to vector<4x128xf32>
    %c36 = arith.constant 36 : index
    %c0_23 = arith.constant 0 : index
    %39 = vector.load %arg7[%c36, %c0_23] : memref<40x128xf32, #tpu.memory_space<vmem>>, vector<4x128xf32>
    tpu.vector_store %arg7[%c36, %c0_23], %38 {strides = array<i32>} : memref<40x128xf32, #tpu.memory_space<vmem>>, vector<4x128xf32>,
    return
  }
  func.func @transform_0(%arg0: i32) -> (i32, i32) {
    %c0_i32 = arith.constant 0 : i32
    %c0_i32_0 = arith.constant 0 : i32
    %c0_i32_1 = arith.constant 0 : i32
    return %c0_i32, %c0_i32_0 : i32, i32
  }
  func.func @transform_1(%arg0: i32) -> (i32, i32) {
    %c0_i32 = arith.constant 0 : i32
    %c0_i32_0 = arith.constant 0 : i32
    %c0_i32_1 = arith.constant 0 : i32
    return %c0_i32, %c0_i32_0 : i32, i32
  }
  func.func @transform_2(%arg0: i32) -> (i32, i32) {
    %c0_i32 = arith.constant 0 : i32
    %c0_i32_0 = arith.constant 0 : i32
    %c0_i32_1 = arith.constant 0 : i32
    return %c0_i32, %c0_i32_0 : i32, i32
  }
  func.func @transform_3(%arg0: i32) -> (i32, i32, i32) {
    %c0_i32 = arith.constant 0 : i32
    %c0_i32_0 = arith.constant 0 : i32
    %c0_i32_1 = arith.constant 0 : i32
    %c0_i32_2 = arith.constant 0 : i32
    return %c0_i32, %c0_i32_0, %c0_i32_1 : i32, i32, i32
  }
  func.func @transform_4(%arg0: i32) -> (i32, i32) {
    %c0_i32 = arith.constant 0 : i32
    %c0_i32_0 = arith.constant 0 : i32
    %c0_i32_1 = arith.constant 0 : i32
    return %c0_i32, %c0_i32_0 : i32, i32
  }
  func.func @transform_5(%arg0: i32) -> (i32, i32) {
    %c0_i32 = arith.constant 0 : i32
    %c0_i32_0 = arith.constant 0 : i32
    return %arg0, %c0_i32 : i32, i32
  }
  func.func @transform_6(%arg0: i32) -> (i32, i32) {
    %c0_i32 = arith.constant 0 : i32
    %c0_i32_0 = arith.constant 0 : i32
    return %arg0, %c0_i32 : i32, i32
  }
}

</mosaic_0001>

<bundles_post_ra>
// kernel: ru_first_down_apply.1
= control target key start
LH: loop header
LB: loop body
LE: loop exit
PB: predicated region body
PF: predicated region fallthrough
CT: control target
= control target key end

     0   :  { %vm48_vm0 = vcmask 1045504   ;;  %vm33_vm1 = vcmask 1046528   ;;  %s1019_s0 = inlined_call_operand.vmem [shape: f32[384,128], index: 0, kind: input, shape index: {}]   ;;  %s1020_s3 = inlined_call_operand.vmem [shape: f32[2,1,128], index: 3, kind: input, shape index: {}]   ;;  %s1021_s5 = inlined_call_operand.vmem [shape: f32[40,128], index: 5, kind: input, shape index: {}]   ;;  %s1022_s2 = inlined_call_operand.vmem [shape: f32[128,128], index: 2, kind: input, shape index: {}]   ;;  %s1023_s1 = inlined_call_operand.vmem [shape: f32[384,128], index: 1, kind: input, shape index: {}]   ;;  %s1024_s4 = inlined_call_operand.vmem [shape: f32[38,128], index: 4, kind: input, shape index: {}]   ;;  %s1025_s6 = inlined_call_operand.vmem [shape: f32[40,128], index: 6, kind: output, shape index: {}]  }
   0x1   :  { %v110_v0 = vld [vmem:[%s1019_s0 + $0x178] sm:$0xff]  ;;  %v109_v2 = vld [vmem:[%s1019_s0 + $0x170] sm:$0xff]  ;;  %v108_v5 = vld [vmem:[%s1019_s0 + $0x168] sm:$0xff] }
   0x2   :  { %v78_v1 = vld [vmem:[%s1019_s0 + $0x78] sm:$0xff]  ;;  %179 = vmatpush.msra.mxu2 %v110_v0  ;;  %v77_v3 = vld [vmem:[%s1019_s0 + $0x70] sm:$0xff]  ;;  %v76_v6 = vld [vmem:[%s1019_s0 + $0x68] sm:$0xff] }
   0x3   :  { %115 = vmatpush.msra.mxu0 %v78_v1  ;;  %v94_v4 = vld [vmem:[%s1019_s0 + $0xf8] sm:$0xff]  ;;  %v93_v7 = vld [vmem:[%s1019_s0 + $0xf0] sm:$0xff]  ;;  %507 = vmatpush.msra.mxu3 %v78_v1  ;;  %v92_v8 = vld [vmem:[%s1019_s0 + $0xe8] sm:$0xff] }
   0x4   :  { %147 = vmatpush.msra.mxu1 %v94_v4  ;;  %180 = vmatpush.msra.mxu2 %v109_v2  ;;  %v107_v9 = vld [vmem:[%s1019_s0 + $0x160] sm:$0xff]  ;;  %v106_v12 = vld [vmem:[%s1019_s0 + $0x158] sm:$0xff]  ;;  %v105_v15 = vld [vmem:[%s1019_s0 + $0x150] sm:$0xff] }
   0x5   :  { %116 = vmatpush.msra.mxu0 %v77_v3  ;;  %v75_v10 = vld [vmem:[%s1019_s0 + $0x60] sm:$0xff]  ;;  %508 = vmatpush.msra.mxu3 %v77_v3  ;;  %v74_v13 = vld [vmem:[%s1019_s0 + $0x58] sm:$0xff]  ;;  %v73_v16 = vld [vmem:[%s1019_s0 + $0x50] sm:$0xff] }
   0x6   :  { %148 = vmatpush.msra.mxu1 %v93_v7  ;;  %181 = vmatpush.msra.mxu2 %v108_v5  ;;  %v91_v11 = vld [vmem:[%s1019_s0 + $0xe0] sm:$0xff]  ;;  %v90_v14 = vld [vmem:[%s1019_s0 + $0xd8] sm:$0xff]  ;;  %v89_v17 = vld [vmem:[%s1019_s0 + $0xd0] sm:$0xff] }
   0x7   :  { %117 = vmatpush.msra.mxu0 %v76_v6  ;;  %509 = vmatpush.msra.mxu3 %v76_v6  ;;  %v104_v18 = vld [vmem:[%s1019_s0 + $0x148] sm:$0xff]  ;;  %v103_v21 = vld [vmem:[%s1019_s0 + $0x140] sm:$0xff]  ;;  %v102_v24 = vld [vmem:[%s1019_s0 + $0x138] sm:$0xff] }
   0x8   :  { %149 = vmatpush.msra.mxu1 %v92_v8  ;;  %182 = vmatpush.msra.mxu2 %v107_v9  ;;  %v72_v19 = vld [vmem:[%s1019_s0 + $0x48] sm:$0xff]  ;;  %v71_v22 = vld [vmem:[%s1019_s0 + $0x40] sm:$0xff]  ;;  %v70_v25 = vld [vmem:[%s1019_s0 + $0x38] sm:$0xff] }
   0x9   :  { %118 = vmatpush.msra.mxu0 %v75_v10  ;;  %510 = vmatpush.msra.mxu3 %v75_v10  ;;  %v88_v20 = vld [vmem:[%s1019_s0 + $0xc8] sm:$0xff]  ;;  %v87_v23 = vld [vmem:[%s1019_s0 + $0xc0] sm:$0xff]  ;;  %v86_v26 = vld [vmem:[%s1019_s0 + $0xb8] sm:$0xff] }
   0xa   :  { %150 = vmatpush.msra.mxu1 %v91_v11  ;;  %183 = vmatpush.msra.mxu2 %v106_v12  ;;  %v101_v27 = vld [vmem:[%s1019_s0 + $0x130] sm:$0xff]  ;;  %v100_v30 = vld [vmem:[%s1019_s0 + $0x128] sm:$0xff]  ;;  %v99_v33 = vld [vmem:[%s1019_s0 + $0x120] sm:$0xff] }
   0xb   :  { %119 = vmatpush.msra.mxu0 %v74_v13  ;;  %511 = vmatpush.msra.mxu3 %v74_v13  ;;  %v69_v28 = vld [vmem:[%s1019_s0 + $0x30] sm:$0xff]  ;;  %v68_v31 = vld [vmem:[%s1019_s0 + $0x28] sm:$0xff]  ;;  %v67_v34 = vld [vmem:[%s1019_s0 + $0x20] sm:$0xff] }
   0xc   :  { %151 = vmatpush.msra.mxu1 %v90_v14  ;;  %184 = vmatpush.msra.mxu2 %v105_v15  ;;  %v85_v29 = vld [vmem:[%s1019_s0 + $0xb0] sm:$0xff]  ;;  %v84_v32 = vld [vmem:[%s1019_s0 + $0xa8] sm:$0xff]  ;;  %v98_v35 = vld [vmem:[%s1019_s0 + $0x118] sm:$0xff] }
   0xd   :  { %120 = vmatpush.msra.mxu0 %v73_v16  ;;  %512 = vmatpush.msra.mxu3 %v73_v16  ;;  %v83_v36 = vld [vmem:[%s1019_s0 + $0xa0] sm:$0xff]  ;;  %v66_v37 = vld [vmem:[%s1019_s0 + $0x18] sm:$0xff]  ;;  %v692_v39 = vld [vmem:[%s1021_s5 + $0x8] sm:$0xff] }
   0xe   :  { %152 = vmatpush.msra.mxu1 %v89_v17  ;;  %185 = vmatpush.msra.mxu2 %v104_v18  ;;  %v23_v38 = vld [vmem:[%s1021_s5] sm:$0xff]  ;;  %v82_v40 = vld [vmem:[%s1019_s0 + $0x98] sm:$0xff]  ;;  %v97_v41 = vld [vmem:[%s1019_s0 + $0x110] sm:$0xff]  ;;  %v50_v45 = vrot.slane %v692_v39, 2  ;;  %v35_v50 = vrot.slane %v692_v39, 1 }
   0xf   :  { %121 = vmatpush.msra.mxu0 %v72_v19  ;;  %513 = vmatpush.msra.mxu3 %v72_v19  ;;  %v65_v42 = vld [vmem:[%s1019_s0 + $0x10] sm:$0xff]  ;;  %v49_v44 = vrot.slane %v23_v38, 2  ;;  %v96_v46 = vld [vmem:[%s1019_s0 + $0x108] sm:$0xff]  ;;  %v34_v49 = vrot.slane %v23_v38, 1  ;;  %v95_v51 = vld [vmem:[%s1019_s0 + $0x100] sm:$0xff] }
  0x10   :  { %153 = vmatpush.msra.mxu1 %v88_v20  ;;  %186 = vmatpush.msra.mxu2 %v103_v21  ;;  %v81_v43 = vld [vmem:[%s1019_s0 + $0x90] sm:$0xff]  ;;  %v64_v47 = vld [vmem:[%s1019_s0 + $0x8] sm:$0xff]  ;;  %v63_v52 = vld [vmem:[%s1019_s0] sm:$0xff] }
  0x11   :  { %122 = vmatpush.msra.mxu0 %v71_v22  ;;  %514 = vmatpush.msra.mxu3 %v71_v22  ;;  %v80_v48 = vld [vmem:[%s1019_s0 + $0x88] sm:$0xff]  ;;  %v724_v53 = vsel %vm48_vm0, %v49_v44, %v50_v45  ;;  %v79_v54 = vld [vmem:[%s1019_s0 + $0x80] sm:$0xff]  ;;  %v732_v55 = vld [vmem:[%s1021_s5 + $0x10] sm:$0xff]  ;;  %v36_v56 = vsel %vm33_vm1, %v34_v49, %v35_v50 }
  0x12   :  { %154 = vmatpush.msra.mxu1 %v87_v23  ;;  %187 = vmatpush.msra.mxu2 %v102_v24  ;;  %v52_v57 = vrot.slane %v732_v55, 2  ;;  %v740_v58 = vld [vmem:[%s1021_s5 + $0x20] sm:$0xff]  ;;  %v322_v59 = vld [vmem:[%s1022_s2 + $0x78] sm:$0xff]  ;;  %v321_v60 = vld [vmem:[%s1022_s2 + $0x70] sm:$0xff]  ;;  %v37_v61 = vrot.slane %v732_v55, 1 }
  0x13   :  { %123 = vmatpush.msra.mxu0 %v70_v25  ;;  %515 = vmatpush.msra.mxu3 %v70_v25  ;;  %v274_v62 = vld [vmem:[%s1023_s1 + $0x78] sm:$0xff]  ;;  %v320_v63 = vld [vmem:[%s1022_s2 + $0x68] sm:$0xff]  ;;  %v273_v0 = vld [vmem:[%s1023_s1 + $0x70] sm:$0xff] }
  0x14   :  { %155 = vmatpush.msra.mxu1 %v86_v26  ;;  %188 = vmatpush.msra.mxu2 %v101_v27  ;;  %v306_v1 = vld [vmem:[%s1023_s1 + $0x178] sm:$0xff]  ;;  %v763_v2 = vsel %vm48_vm0, %v50_v45, %v52_v57  ;;  %v305_v3 = vld [vmem:[%s1023_s1 + $0x170] sm:$0xff]  ;;  %v319_v5 = vld [vmem:[%s1022_s2 + $0x60] sm:$0xff]  ;;  %v38_v7 = vsel %vm33_vm1, %v35_v50, %v37_v61 }
  0x15   :  { %124 = vmatpush.msra.mxu0 %v69_v28  ;;  %516 = vmatpush.msra.mxu3 %v69_v28  ;;  %v771_v4 = vld [vmem:[%s1021_s5 + $0x18] sm:$0xff]  ;;  %v272_v6 = vld [vmem:[%s1023_s1 + $0x68] sm:$0xff]  ;;  %v271_v10 = vld [vmem:[%s1023_s1 + $0x60] sm:$0xff]  ;;  %v839_v28 = vrot.slane %v740_v58, 2 }
  0x16   :  { %156 = vmatpush.msra.mxu1 %v85_v29  ;;  %189 = vmatpush.msra.mxu2 %v100_v30  ;;  %v304_v8 = vld [vmem:[%s1023_s1 + $0x168] sm:$0xff]  ;;  %v318_v9 = vld [vmem:[%s1022_s2 + $0x58] sm:$0xff]  ;;  %v54_v11 = vrot.slane %v771_v4, 2  ;;  %v303_v13 = vld [vmem:[%s1023_s1 + $0x160] sm:$0xff]  ;;  %v39_v16 = vrot.slane %v771_v4, 1 }
  0x17   :  { %125 = vmatpush.msra.mxu0 %v68_v31  ;;  %517 = vmatpush.msra.mxu3 %v68_v31  ;;  %v290_v12 = vld [vmem:[%s1023_s1 + $0xf8] sm:$0xff]  ;;  %v317_v14 = vld [vmem:[%s1022_s2 + $0x50] sm:$0xff]  ;;  %v316_v19 = vld [vmem:[%s1022_s2 + $0x48] sm:$0xff] }
  0x18   :  { %157 = vmatpush.msra.mxu1 %v84_v32  ;;  %190 = vmatpush.msra.mxu2 %v99_v33  ;;  %v270_v15 = vld [vmem:[%s1023_s1 + $0x58] sm:$0xff]  ;;  %v289_v17 = vld [vmem:[%s1023_s1 + $0xf0] sm:$0xff]  ;;  %v818_v21 = vsel %vm48_vm0, %v52_v57, %v54_v11  ;;  %v315_v22 = vld [vmem:[%s1022_s2 + $0x40] sm:$0xff]  ;;  %v40_v24 = vsel %vm33_vm1, %v37_v61, %v39_v16  ;;  %v41_v33 = vrot.slane %v740_v58, 1 }
  0x19   :  { %126 = vmatpush.msra.mxu0 %v67_v34  ;;  %518 = vmatpush.msra.mxu3 %v67_v34  ;;  %v302_v18 = vld [vmem:[%s1023_s1 + $0x158] sm:$0xff]  ;;  %v269_v20 = vld [vmem:[%s1023_s1 + $0x50] sm:$0xff]  ;;  %v288_v23 = vld [vmem:[%s1023_s1 + $0xe8] sm:$0xff] }
  0x1a   :  { %158 = vmatpush.msra.mxu1 %v83_v36  ;;  %191 = vmatpush.msra.mxu2 %v98_v35  ;;  %v268_v25 = vld [vmem:[%s1023_s1 + $0x48] sm:$0xff]  ;;  %v314_v26 = vld [vmem:[%s1022_s2 + $0x38] sm:$0xff]  ;;  %v287_v27 = vld [vmem:[%s1023_s1 + $0xe0] sm:$0xff] }
  0x1b   :  { %127 = vmatpush.msra.mxu0 %v66_v37  ;;  %519 = vmatpush.msra.mxu3 %v66_v37  ;;  %v267_v29 = vld [vmem:[%s1023_s1 + $0x40] sm:$0xff]  ;;  %v301_v30 = vld [vmem:[%s1023_s1 + $0x150] sm:$0xff]  ;;  %v286_v32 = vld [vmem:[%s1023_s1 + $0xd8] sm:$0xff] }
  0x1c   :  { %159 = vmatpush.msra.mxu1 %v82_v40  ;;  %192 = vmatpush.msra.mxu2 %v97_v41  ;;  %v313_v31 = vld [vmem:[%s1022_s2 + $0x30] sm:$0xff]  ;;  %v266_v34 = vld [vmem:[%s1023_s1 + $0x38] sm:$0xff]  ;;  %v300_v35 = vld [vmem:[%s1023_s1 + $0x148] sm:$0xff]  ;;  %v42_v41 = vsel %vm33_vm1, %v39_v16, %v41_v33 }
  0x1d   :  { %128 = vmatpush.msra.mxu0 %v65_v42  ;;  %520 = vmatpush.msra.mxu3 %v65_v42  ;;  %v312_v36 = vld [vmem:[%s1022_s2 + $0x28] sm:$0xff]  ;;  %v285_v37 = vld [vmem:[%s1023_s1 + $0xd0] sm:$0xff]  ;;  %v310_v42 = vld [vmem:[%s1022_s2 + $0x18] sm:$0xff] }
  0x1e   :  { %160 = vmatpush.msra.mxu1 %v81_v43  ;;  %193 = vmatpush.msra.mxu2 %v96_v46  ;;  %v265_v40 = vld [vmem:[%s1023_s1 + $0x30] sm:$0xff]  ;;  %v264_v44 = vld [vmem:[%s1023_s1 + $0x28] sm:$0xff]  ;;  %v299_v45 = vld [vmem:[%s1023_s1 + $0x140] sm:$0xff] }
  0x1f   :  { %129 = vmatpush.msra.mxu0 %v64_v47  ;;  %521 = vmatpush.msra.mxu3 %v64_v47  ;;  %v309_v43 = vld [vmem:[%s1022_s2 + $0x10] sm:$0xff]  ;;  %v284_v46 = vld [vmem:[%s1023_s1 + $0xc8] sm:$0xff]  ;;  %v298_v49 = vld [vmem:[%s1023_s1 + $0x138] sm:$0xff] }
  0x20   :  { %161 = vmatpush.msra.mxu1 %v80_v48  ;;  %194 = vmatpush.msra.mxu2 %v95_v51  ;;  %v308_v47 = vld [vmem:[%s1022_s2 + $0x8] sm:$0xff]  ;;  %v263_v48 = vld [vmem:[%s1023_s1 + $0x20] sm:$0xff]  ;;  %v262_v51 = vld [vmem:[%s1023_s1 + $0x18] sm:$0xff] }
  0x21   :  { %130 = vmatpush.msra.mxu0 %v63_v52  ;;  %195 = vmatmul.f32.vlgmr.msra.gmra.mxu2 %v724_v53  ;;  %v307_v50 = vld [vmem:[%s1022_s2] sm:$0xff]  ;;  %v297_v57 = vld [vmem:[%s1023_s1 + $0x130] sm:$0xff]  ;;  %v280_v61 = vld [vmem:[%s1023_s1 + $0xa8] sm:$0xff] }
  0x22   :  { %131 = vmatmul.f32.vlgmr.msra.gmra.mxu0 %v23_v38  ;;  %162 = vmatpush.msra.mxu1 %v79_v54  ;;  %v868_v38 = vsel %vm48_vm0, %v54_v11, %v839_v28  ;;  %v261_v54 = vld [vmem:[%s1023_s1 + $0x10] sm:$0xff] }
  0x23   :  { %522 = vmatpush.msra.mxu3 %v63_v52  ;;  %163 = vmatmul.f32.vlgmr.msra.gmra.mxu1 %v36_v56  ;;  %v283_v52 = vld [vmem:[%s1023_s1 + $0xc0] sm:$0xff]  ;;  %v260_v56 = vld [vmem:[%s1023_s1 + $0x8] sm:$0xff] }
  0x24   :  { %143 = vmatmul.f32.vlgmr.msra.gmra.mxu3 %v740_v58  ;;  %355 = vmatpush.msrb.mxu0 %v274_v62  ;;  %v296_v58 = vld [vmem:[%s1023_s1 + $0x128] sm:$0xff]  ;;  %v279_v62 = vld [vmem:[%s1023_s1 + $0xa0] sm:$0xff] }
  0x25   :  { %323 = vmatpush.msrb.mxu3 %v322_v59  ;;  %419 = vmatpush.msrb.mxu2 %v306_v1  ;;  %v259_v59 = vld [vmem:[%s1023_s1] sm:$0xff]  ;;  %v293_v1 = vld [vmem:[%s1023_s1 + $0x110] sm:$0xff] }
  0x26   :  { %356 = vmatpush.msrb.mxu0 %v273_v0  ;;  %387 = vmatpush.msrb.mxu1 %v290_v12  ;;  %v278_v0 = vld [vmem:[%s1023_s1 + $0x98] sm:$0xff] }
  0x27   :  { %324 = vmatpush.msrb.mxu3 %v321_v60  ;;  %420 = vmatpush.msrb.mxu2 %v305_v3  ;;  %v295_v60 = vld [vmem:[%s1023_s1 + $0x120] sm:$0xff]  ;;  %v277_v3 = vld [vmem:[%s1023_s1 + $0x90] sm:$0xff] }
  0x28   :  { %357 = vmatpush.msrb.mxu0 %v272_v6  ;;  %388 = vmatpush.msrb.mxu1 %v289_v17  ;;  %v275_v6 = vld [vmem:[%s1023_s1 + $0x80] sm:$0xff] }
  0x29   :  { %325 = vmatpush.msrb.mxu3 %v320_v63  ;;  %198 = vmatmul.f32.gmra.mxu2 %v763_v2  ;;  %v294_v63 = vld [vmem:[%s1023_s1 + $0x118] sm:$0xff] }
  0x2a   :  { %134 = vmatmul.f32.gmra.mxu0 %v692_v39  ;;  %421 = vmatpush.msrb.mxu2 %v304_v8  ;;  %v311_v39 = vld [vmem:[%s1022_s2 + $0x20] sm:$0xff] }
  0x2b   :  { %326 = vmatpush.msrb.mxu3 %v319_v5  ;;  %166 = vmatmul.f32.gmra.mxu1 %v38_v7  ;;  %v291_v5 = vld [vmem:[%s1023_s1 + $0x100] sm:$0xff] }
  0x2c   :  { %358 = vmatpush.msrb.mxu0 %v271_v10  ;;  %422 = vmatpush.msrb.mxu2 %v303_v13  ;;  %v524_v7 = vld [vmem:[%s1020_s3] ss:$0 sm:$0xff] }
  0x2d   :  { %327 = vmatpush.msrb.mxu3 %v318_v9  ;;  %389 = vmatpush.msrb.mxu1 %v288_v23  ;;  %v217_v23 = vld [vmem:[%s1024_s4 + $0x8] sm:$0xff] }
  0x2e   :  { %359 = vmatpush.msrb.mxu0 %v270_v15  ;;  %423 = vmatpush.msrb.mxu2 %v302_v18 }
  0x2f   :  { %328 = vmatpush.msrb.mxu3 %v317_v14  ;;  %390 = vmatpush.msrb.mxu1 %v287_v27  ;;  %v216_v14 = vld [vmem:[%s1024_s4] sm:$0xff] }
  0x30   :  { %360 = vmatpush.msrb.mxu0 %v269_v20  ;;  %424 = vmatpush.msrb.mxu2 %v301_v30 }
  0x31   :  { %329 = vmatpush.msrb.mxu3 %v316_v19  ;;  %201 = vmatmul.f32.gmra.mxu2 %v818_v21 }
  0x32   :  { %137 = vmatmul.f32.gmra.mxu0 %v732_v55  ;;  %391 = vmatpush.msrb.mxu1 %v286_v32  ;;  %v282_v55 = vld [vmem:[%s1023_s1 + $0xb8] sm:$0xff] }
  0x33   :  { %330 = vmatpush.msrb.mxu3 %v315_v22  ;;  %169 = vmatmul.f32.gmra.mxu1 %v40_v24 }
  0x34   :  { %361 = vmatpush.msrb.mxu0 %v268_v25  ;;  %425 = vmatpush.msrb.mxu2 %v300_v35 }
  0x35   :  { %331 = vmatpush.msrb.mxu3 %v314_v26  ;;  %392 = vmatpush.msrb.mxu1 %v285_v37 }
  0x36   :  { %362 = vmatpush.msrb.mxu0 %v267_v29  ;;  %426 = vmatpush.msrb.mxu2 %v299_v45 }
  0x37   :  { %332 = vmatpush.msrb.mxu3 %v313_v31  ;;  %393 = vmatpush.msrb.mxu1 %v284_v46 }
  0x38   :  { %363 = vmatpush.msrb.mxu0 %v266_v34  ;;  %427 = vmatpush.msrb.mxu2 %v298_v49 }
  0x39   :  { %333 = vmatpush.msrb.mxu3 %v312_v36  ;;  %204 = vmatmul.f32.gmra.mxu2 %v868_v38 }
  0x3a   :  { %140 = vmatmul.f32.gmra.mxu0 %v771_v4  ;;  %394 = vmatpush.msrb.mxu1 %v283_v52  ;;  %v276_v4 = vld [vmem:[%s1023_s1 + $0x88] sm:$0xff] }
  0x3b   :  { %334 = vmatpush.msrb.mxu3 %v311_v39  ;;  %364 = vmatpush.msrb.mxu0 %v265_v40 }
  0x3c   :  { %172 = vmatmul.f32.gmra.mxu1 %v42_v41  ;;  %428 = vmatpush.msrb.mxu2 %v297_v57 }
  0x3d   :  { %335 = vmatpush.msrb.mxu3 %v310_v42  ;;  %365 = vmatpush.msrb.mxu0 %v264_v44 }
  0x3e   :  { %395 = vmatpush.msrb.mxu1 %v282_v55  ;;  %429 = vmatpush.msrb.mxu2 %v296_v58 }
  0x3f   :  { %336 = vmatpush.msrb.mxu3 %v309_v43  ;;  %366 = vmatpush.msrb.mxu0 %v263_v48 }
  0x40   :  { %430 = vmatpush.msrb.mxu2 %v295_v60 }
  0x41   :  { %207 = vmatmul.f32.gmra.mxu2 %v839_v28  ;;  %337 = vmatpush.msrb.mxu3 %v308_v47 }
  0x42   :  { %367 = vmatpush.msrb.mxu0 %v262_v51  ;;  %431 = vmatpush.msrb.mxu2 %v294_v63 }
  0x43   :  { %338 = vmatpush.msrb.mxu3 %v307_v50 }
  0x44   :  { %175 = vmatmul.f32.gmra.mxu1 %v41_v33  ;;  %339 = vmatmul.f32.vlgmr.msrb.gmra.mxu3 %v724_v53  ;;  %v281_v53 = vld [vmem:[%s1023_s1 + $0xb0] sm:$0xff] }
  0x45   :  { %368 = vmatpush.msrb.mxu0 %v261_v54  ;;  %396 = vmatpush.msrb.mxu1 %v281_v53  ;;  %v219_v54 = vld [vmem:[%s1024_s4 + $0x18] sm:$0xff] }
  0x46   :  { %432 = vmatpush.msrb.mxu2 %v293_v1 }
  0x47   :  { %369 = vmatpush.msrb.mxu0 %v260_v56  ;;  %397 = vmatpush.msrb.mxu1 %v280_v61 }
  0x49   :  { %370 = vmatpush.msrb.mxu0 %v259_v59  ;;  %398 = vmatpush.msrb.mxu1 %v279_v62 }
  0x4b   :  { %399 = vmatpush.msrb.mxu1 %v278_v0  ;;  %v220_v0 = vld [vmem:[%s1024_s4 + $0x20] sm:$0x3f] }
  0x4c   :  { %342 = vmatmul.f32.gmra.mxu3 %v763_v2  ;;  %v292_v2 = vld [vmem:[%s1023_s1 + $0x108] sm:$0xff] }
  0x4d   :  { %400 = vmatpush.msrb.mxu1 %v277_v3  ;;  %433 = vmatpush.msrb.mxu2 %v292_v2 }
  0x4f   :  { %401 = vmatpush.msrb.mxu1 %v276_v4  ;;  %434 = vmatpush.msrb.mxu2 %v291_v5 }
  0x51   :  { %402 = vmatpush.msrb.mxu1 %v275_v6 }
  0x54   :  { %345 = vmatmul.f32.gmra.mxu3 %v818_v21 }
  0x5c   :  { %348 = vmatmul.f32.gmra.mxu3 %v868_v38  ;;  %v218_v38 = vld [vmem:[%s1024_s4 + $0x10] sm:$0xff] }
  0x64   :  { %351 = vmatmul.f32.gmra.mxu3 %v839_v28 }
  0x9f   :  { %v132_v8 = vpop.f32.mrf.mxu0 }
  0xa0   :  { %v133_v9 = vadd.f32 %v524_v7, %v132_v8  ;;  %v164_v10 = vpop.f32.mrf.mxu1 }
  0xa2   :  { %v165_v11 = vadd.f32 %v164_v10, %v133_v9  ;;  %v536_v9 = vmov 0.0  }
  0xa3   :  { %496 = vst [vmem:[%s1025_s6 + $0x24] sm:$0xf] %v536_v9 }
  0xa4   :  { %v196_v12 = vpop.f32.mrf.mxu2 }
  0xa5   :  { %v197_v13 = vadd.f32 %v196_v12, %v165_v11 }
  0xa7   :  { %v135_v15 = vpop.f32.mrf.mxu0  ;;  %v211_v16 = vmax.f32 %v197_v13, 0.0  ;;  %v144_v45 = vpop.f32.mrf.mxu3 }
  0xa8   :  { %v136_v17 = vadd.f32 %v524_v7, %v135_v15  ;;  %v167_v18 = vpop.f32.mrf.mxu1  ;;  %v145_v52 = vadd.f32 %v524_v7, %v144_v45  ;;  %v525_v15 = vld [vmem:[%s1020_s3 + $0x1] ss:$0 sm:$0xff] }
  0xa9   :  { %v221_v19 = vmul.f32 %v216_v14, %v211_v16 }
  0xaa   :  { %v168_v20 = vadd.f32 %v167_v18, %v136_v17 }
  0xab   :  { %371 = vmatmul.f32.vlgmr.msrb.gmra.mxu0 %v221_v19  ;;  %v231_v30 = vrot.slane %v221_v19, 1  ;;  %v245_v32 = vrot.slane %v221_v19, 2 }
  0xac   :  { %v199_v21 = vpop.f32.mrf.mxu2 }
  0xad   :  { %v200_v22 = vadd.f32 %v199_v21, %v168_v20 }
  0xaf   :  { %v138_v24 = vpop.f32.mrf.mxu0  ;;  %v212_v25 = vmax.f32 %v200_v22, 0.0 }
  0xb0   :  { %v139_v26 = vadd.f32 %v524_v7, %v138_v24  ;;  %v170_v27 = vpop.f32.mrf.mxu1 }
  0xb1   :  { %v222_v28 = vmul.f32 %v217_v23, %v212_v25 }
  0xb2   :  { %v171_v29 = vadd.f32 %v170_v27, %v139_v26 }
  0xb3   :  { %374 = vmatmul.f32.gmra.mxu0 %v222_v28  ;;  %v232_v31 = vrot.slane %v222_v28, 1  ;;  %v246_v33 = vrot.slane %v222_v28, 2 }
  0xb4   :  { %v202_v34 = vpop.f32.mrf.mxu2 }
  0xb5   :  { %v203_v35 = vadd.f32 %v202_v34, %v171_v29  ;;  %v233_v36 = vsel %vm33_vm1, %v231_v30, %v232_v31  ;;  %v247_v37 = vsel %vm48_vm0, %v245_v32, %v246_v33 }
  0xb6   :  { %403 = vmatmul.f32.vlgmr.msrb.gmra.mxu1 %v233_v36  ;;  %435 = vmatmul.f32.vlgmr.msrb.gmra.mxu2 %v247_v37 }
  0xb7   :  { %v141_v39 = vpop.f32.mrf.mxu0  ;;  %v213_v40 = vmax.f32 %v203_v35, 0.0 }
  0xb8   :  { %v142_v41 = vadd.f32 %v524_v7, %v141_v39 }
  0xb9   :  { %v173_v42 = vpop.f32.mrf.mxu1  ;;  %v223_v43 = vmul.f32 %v218_v38, %v213_v40 }
  0xba   :  { %v174_v44 = vadd.f32 %v173_v42, %v142_v41 }
  0xbb   :  { %377 = vmatmul.f32.gmra.mxu0 %v223_v43  ;;  %v234_v46 = vrot.slane %v223_v43, 1  ;;  %v248_v47 = vrot.slane %v223_v43, 2 }
  0xbc   :  { %v205_v48 = vpop.f32.mrf.mxu2 }
  0xbd   :  { %v206_v49 = vadd.f32 %v205_v48, %v174_v44  ;;  %v235_v50 = vsel %vm33_vm1, %v232_v31, %v234_v46  ;;  %v249_v51 = vsel %vm48_vm0, %v246_v33, %v248_v47 }
  0xbe   :  { %406 = vmatmul.f32.gmra.mxu1 %v235_v50  ;;  %438 = vmatmul.f32.gmra.mxu2 %v249_v51 }
  0xbf   :  { %v214_v55 = vmax.f32 %v206_v49, 0.0 }
  0xc1   :  { %v176_v56 = vpop.f32.mrf.mxu1  ;;  %v224_v57 = vmul.f32 %v219_v54, %v214_v55 }
  0xc2   :  { %v177_v53 = vadd.f32 %v176_v56, %v145_v52 }
  0xc3   :  { %380 = vmatmul.f32.gmra.mxu0 %v224_v57  ;;  %v236_v58 = vrot.slane %v224_v57, 1  ;;  %v250_v59 = vrot.slane %v224_v57, 2 }
  0xc4   :  { %v208_v60 = vpop.f32.mrf.mxu2 }
  0xc5   :  { %v209_v61 = vadd.f32 %v208_v60, %v177_v53  ;;  %v237_v62 = vsel %vm33_vm1, %v234_v46, %v236_v58  ;;  %v251_v63 = vsel %vm48_vm0, %v248_v47, %v250_v59 }
  0xc6   :  { %409 = vmatmul.f32.gmra.mxu1 %v237_v62  ;;  %441 = vmatmul.f32.gmra.mxu2 %v251_v63 }
  0xc7   :  { %v215_v1 = vmax.f32 %v209_v61, 0.0  ;;  %v340_v7 = vpop.f32.mrf.mxu3 }
  0xc9   :  { %v225_v3 = vmul.f32 %v220_v0, %v215_v1 }
  0xcb   :  { %383 = vmatmul.f32.gmra.mxu0 %v225_v3  ;;  %v238_v2 = vrot.slane %v225_v3, 1  ;;  %v252_v4 = vrot.slane %v225_v3, 2 }
  0xcd   :  { %v239_v5 = vsel %vm33_vm1, %v236_v58, %v238_v2  ;;  %v253_v6 = vsel %vm48_vm0, %v250_v59, %v252_v4 }
  0xce   :  { %412 = vmatmul.f32.gmra.mxu1 %v239_v5  ;;  %444 = vmatmul.f32.gmra.mxu2 %v253_v6 }
  0xcf   :  { %v343_v11 = vpop.f32.mrf.mxu3 }
  0xd6   :  { %415 = vmatmul.f32.gmra.mxu1 %v238_v2  ;;  %447 = vmatmul.f32.gmra.mxu2 %v252_v4 }
  0xd7   :  { %v346_v21 = vpop.f32.mrf.mxu3 }
  0xdf   :  { %v349_v33 = vpop.f32.mrf.mxu3 }
  0xe7   :  { %v352_v52 = vpop.f32.mrf.mxu3 }
 0x128   :  { %v372_v8 = vpop.f32.mrf.mxu0 }
 0x129   :  { %v373_v13 = vadd.f32 %v372_v8, %v340_v7 }
 0x130   :  { %v375_v12 = vpop.f32.mrf.mxu0 }
 0x131   :  { %v376_v20 = vadd.f32 %v375_v12, %v343_v11 }
 0x133   :  { %v404_v10 = vpop.f32.mrf.mxu1 }
 0x134   :  { %v405_v14 = vadd.f32 %v404_v10, %v373_v13 }
 0x138   :  { %v378_v23 = vpop.f32.mrf.mxu0 }
 0x139   :  { %v436_v16 = vpop.f32.mrf.mxu2  ;;  %v379_v30 = vadd.f32 %v378_v23, %v346_v21 }
 0x13a   :  { %v437_v17 = vadd.f32 %v436_v16, %v405_v14 }
 0x13b   :  { %v407_v18 = vpop.f32.mrf.mxu1 }
 0x13c   :  { %v456_v19 = vadd.f32 %v525_v15, %v437_v17  ;;  %v408_v25 = vadd.f32 %v407_v18, %v376_v20 }
 0x13e   :  { %v466_v22 = vmin.f32 %v456_v19, 0.0  ;;  %vm461_vm2 = vcmp.gt.f32.partialorder %v456_v19, 0.0 }
 0x140   :  { %v471_v24 = vmul.f32 1.442695, %v466_v22  ;;  %v381_v37 = vpop.f32.mrf.mxu0 }
 0x141   :  { %v439_v26 = vpop.f32.mrf.mxu2  ;;  %v382_v43 = vadd.f32 %v381_v37, %v349_v33 }
 0x142   :  { %526 = vpow2.f32 %v471_v24  ;;  %v440_v27 = vadd.f32 %v439_v26, %v408_v25 }
 0x143   :  { %v410_v28 = vpop.f32.mrf.mxu1 }
 0x144   :  { %v457_v29 = vadd.f32 %v525_v15, %v440_v27  ;;  %v411_v35 = vadd.f32 %v410_v28, %v379_v30 }
 0x146   :  { %v467_v31 = vmin.f32 %v457_v29, 0.0  ;;  %vm462_vm3 = vcmp.gt.f32.partialorder %v457_v29, 0.0 }
 0x148   :  { %v527_v32 = vpop.eup %526  ;;  %v473_v34 = vmul.f32 1.442695, %v467_v31  ;;  %v384_v54 = vpop.f32.mrf.mxu0 }
 0x149   :  { %v502_v36 = vadd.f32 -1.0, %v527_v32  ;;  %v442_v38 = vpop.f32.mrf.mxu2  ;;  %v385_v57 = vadd.f32 %v384_v54, %v352_v52 }
 0x14a   :  { %528 = vpow2.f32 %v473_v34  ;;  %v443_v39 = vadd.f32 %v442_v38, %v411_v35 }
 0x14b   :  { %v486_v40 = vsel %vm461_vm2, %v456_v19, %v502_v36  ;;  %v413_v41 = vpop.f32.mrf.mxu1 }
 0x14c   :  { %491 = vst [vmem:[%s1025_s6] sm:$0xff] %v486_v40  ;;  %v458_v42 = vadd.f32 %v525_v15, %v443_v39  ;;  %v414_v47 = vadd.f32 %v413_v41, %v382_v43 }
 0x14e   :  { %v468_v44 = vmin.f32 %v458_v42, 0.0  ;;  %vm463_vm4 = vcmp.gt.f32.partialorder %v458_v42, 0.0 }
 0x150   :  { %v529_v45 = vpop.eup %528  ;;  %v475_v46 = vmul.f32 1.442695, %v468_v44 }
 0x151   :  { %v503_v48 = vadd.f32 -1.0, %v529_v45  ;;  %v445_v49 = vpop.f32.mrf.mxu2 }
 0x152   :  { %530 = vpow2.f32 %v475_v46  ;;  %v446_v50 = vadd.f32 %v445_v49, %v414_v47 }
 0x153   :  { %v487_v51 = vsel %vm462_vm3, %v457_v29, %v503_v48  ;;  %v416_v56 = vpop.f32.mrf.mxu1 }
 0x154   :  { %492 = vst [vmem:[%s1025_s6 + $0x8] sm:$0xff] %v487_v51  ;;  %v459_v55 = vadd.f32 %v525_v15, %v446_v50  ;;  %v417_v60 = vadd.f32 %v416_v56, %v385_v57 }
 0x156   :  { %v469_v53 = vmin.f32 %v459_v55, 0.0  ;;  %vm464_vm5 = vcmp.gt.f32.partialorder %v459_v55, 0.0 }
 0x158   :  { %v531_v58 = vpop.eup %530  ;;  %v477_v59 = vmul.f32 1.442695, %v469_v53 }
 0x159   :  { %v504_v61 = vadd.f32 -1.0, %v531_v58  ;;  %v448_v62 = vpop.f32.mrf.mxu2 }
 0x15a   :  { %532 = vpow2.f32 %v477_v59  ;;  %v449_v63 = vadd.f32 %v448_v62, %v417_v60 }
 0x15b   :  { %v488_v0 = vsel %vm463_vm4, %v458_v42, %v504_v61 }
 0x15c   :  { %493 = vst [vmem:[%s1025_s6 + $0x10] sm:$0xff] %v488_v0  ;;  %v460_v1 = vadd.f32 %v525_v15, %v449_v63 }
 0x15e   :  { %v470_v3 = vmin.f32 %v460_v1, 0.0  ;;  %vm465_vm6 = vcmp.gt.f32.partialorder %v460_v1, 0.0 }
 0x160   :  { %v533_v2 = vpop.eup %532  ;;  %v479_v4 = vmul.f32 1.442695, %v470_v3 }
 0x161   :  { %v505_v5 = vadd.f32 -1.0, %v533_v2 }
 0x162   :  { %534 = vpow2.f32 %v479_v4 }
 0x163   :  { %v489_v6 = vsel %vm464_vm5, %v459_v55, %v505_v5 }
 0x164   :  { %494 = vst [vmem:[%s1025_s6 + $0x18] sm:$0xff] %v489_v6 }
 0x168   :  { %v535_v7 = vpop.eup %534 }
 0x169   :  { %v506_v8 = vadd.f32 -1.0, %v535_v7 }
 0x16b   :  { %v490_v9 = vsel %vm465_vm6, %v460_v1, %v506_v8 }
 0x16c   :  { %495 = vst [vmem:[%s1025_s6 + $0x20] sm:$0xf] %v490_v9 }

</bundles_post_ra>
